<compile_context>
chip_gen: v6e
topology: v6e:2x2x1
jax: 0.10.0
libtpu: 0.0.40
codegen_flags: <defaults>
</compile_context>

<pallas_src>
import functools

import jax
import jax.numpy as jnp
from jax.experimental import pallas as pl
from jax.experimental.pallas import tpu as pltpu


def _round_up(n, m):
    return ((n + m - 1) // m) * m


def _cdiv(a, b):
    return (a + b - 1) // b


def _pad2d(a, rows, cols):
    r, c = a.shape
    if r == rows and c == cols:
        return a
    return jnp.pad(a, ((0, rows - r), (0, cols - c)))


def _elementwise_dtype(compute_dtype):
    """bf16 bias+tanh on chips with a bf16 VPU/EUP (v6e/v7x); f32 elsewhere."""
    if jnp.dtype(compute_dtype) != jnp.bfloat16:
        return jnp.float32
    try:
        kind = jax.devices()[0].device_kind.lower()
    except Exception:
        return jnp.float32
    for old in ("v2", "v3", "v4", "v5"):
        if old in kind:
            return jnp.float32        # no bf16 VPU/EUP path on these chips
    return jnp.bfloat16


def _vmem_cap_bytes():
    """Generation-aware VMEM ceiling (v7x: 64 MiB/TC) with compiler headroom."""
    phys = 64 << 20                    # conservative default = v7x per-TC VMEM
    try:
        phys = int(pltpu.get_tpu_info().vmem_capacity_bytes)
    except Exception:
        pass
    return max(min(phys * 3 // 4, 96 << 20), 16 << 20)


def classifier_kernel(x_ref, w1_ref, b1_ref, w2_ref, b2_ref, o_ref, h_acc,
                      *, act_dtype):
    k = pl.program_id(1)

    @pl.when(k == 0)
    def _():
        h_acc[...] = jnp.zeros_like(h_acc)

    # dense: accumulate x @ W1 over the K (hidden-in) axis; f32 MXU accumulation.
    # x is cast to the MXU dtype here (in-kernel) rather than in the wrapper.
    xb = x_ref[...].astype(w1_ref.dtype)
    h_acc[...] += jnp.dot(xb, w1_ref[...], preferred_element_type=jnp.float32)

    @pl.when(k == pl.num_programs(1) - 1)
    def _():
        # bias + tanh (EUP): bf16 on v6e/v7x, f32 on v5e.
        h = jnp.tanh((h_acc[...] + b1_ref[...]).astype(act_dtype))
        # decoder: h @ W2 + b2
        y = jnp.dot(h.astype(w2_ref.dtype), w2_ref[...],
                    preferred_element_type=jnp.float32)
        o_ref[...] = (y + b2_ref[...]).astype(o_ref.dtype)


def prepare_params(w1, b1, w2, b2, *, compute_dtype=jnp.bfloat16):
    """Pad + cast parameters once, outside the per-call hot path.

    Weights are stored (in, out).  Zero-padded rows/cols contribute exactly
    zero through tanh and the decoder, so numerics are unchanged.
    """
    H = w1.shape[0]
    O = w2.shape[1]
    H_pad = _round_up(H, 128)
    O_pad = _round_up(O, 128)
    cdt = jnp.dtype(compute_dtype)
    return dict(
        w1=_pad2d(w1, H_pad, H_pad).astype(cdt),
        b1=_pad2d(b1.reshape(1, -1), 1, H_pad).astype(jnp.float32),
        w2=_pad2d(w2, H_pad, O_pad).astype(cdt),
        b2=_pad2d(b2.reshape(1, -1), 1, O_pad).astype(jnp.float32),
        H=H, O=O, H_pad=H_pad, O_pad=O_pad, compute_dtype=cdt,
    )


def classifier_forward(x, params, *, tile_m=512, tile_k=512):
    """x: (M, H); params from prepare_params -> (M, O)."""
    M, H = x.shape
    assert H == params["H"], "hidden size mismatch with prepared params"
    H_pad, O_pad, O = params["H_pad"], params["O_pad"], params["O"]
    cdt = params["compute_dtype"]
    out_dtype = x.dtype
    act_dtype = _elementwise_dtype(cdt)

    # ---- K (hidden-in) tiling: TK divides H_pad (both multiples of 128).
    TK = min(_round_up(max(int(tile_k), 128), 128), H_pad)
    while H_pad % TK:
        TK -= 128
    grid_k = H_pad // TK

    # ---- balanced row tiling, always a multiple of 8.
    n_tiles = _cdiv(M, max(int(tile_m), 8))
    if n_tiles == 1 and M >= 16:
        # Split across 2 tiles so v7x's second TensorCore gets work, but only
        # when the duplicated W1 read is free (W1 resident) or negligible.
        if H_pad <= TK or M >= H_pad:
            n_tiles = 2
    TM = _round_up(_cdiv(M, n_tiles), 8)
    M_pad = _round_up(M, TM)
    grid_m = M_pad // TM

    # x is only zero-padded here (no dtype conversion pass in the wrapper).
    x_p = _pad2d(x, M_pad, H_pad)

    # ---- VMEM budget: resident W2/biases + f32 accumulator + double-buffered
    #      x / W1 / out tiles; capped by the chip's physical VMEM.
    w_isz = cdt.itemsize
    x_isz = jnp.dtype(x.dtype).itemsize
    o_isz = jnp.dtype(out_dtype).itemsize
    working_set = (
        H_pad * O_pad * w_isz            # W2 (resident)
        + (H_pad + O_pad) * 4            # biases (f32, resident)
        + TM * H_pad * 4                 # h accumulator scratch (f32)
        + 2 * TM * TK * x_isz            # double-buffered x tiles
        + 2 * TK * H_pad * w_isz         # double-buffered W1 tiles
        + 2 * TM * O_pad * o_isz         # double-buffered out tiles
    )
    vmem_limit = int(min(working_set * 3 // 2 + (8 << 20), _vmem_cap_bytes()))

    cost = pl.CostEstimate(
        flops=2 * M_pad * H_pad * H_pad + 2 * M_pad * H_pad * O_pad,
        transcendentals=M_pad * H_pad,
        bytes_accessed=(M_pad * H_pad * x_isz
                        + grid_m * H_pad * H_pad * w_isz
                        + H_pad * O_pad * w_isz
                        + (H_pad + O_pad) * 4
                        + M_pad * O_pad * o_isz),
    )

    out_padded = pl.pallas_call(
        functools.partial(classifier_kernel, act_dtype=act_dtype),
        out_shape=jax.ShapeDtypeStruct((M_pad, O_pad), out_dtype),
        grid_spec=pltpu.PrefetchScalarGridSpec(
            num_scalar_prefetch=0,
            grid=(grid_m, grid_k),
            in_specs=[
                pl.BlockSpec((TM, TK), lambda i, k: (i, k)),        # x (pipelined)
                pl.BlockSpec((TK, H_pad), lambda i, k: (k, 0)),     # W1 (streamed / resident if grid_k==1)
                pl.BlockSpec((1, H_pad), lambda i, k: (0, 0)),      # b1 (resident)
                pl.BlockSpec((H_pad, O_pad), lambda i, k: (0, 0)),  # W2 (resident)
                pl.BlockSpec((1, O_pad), lambda i, k: (0, 0)),      # b2 (resident)
            ],
            out_specs=pl.BlockSpec((TM, O_pad), lambda i, k: (i, 0)),
            scratch_shapes=[pltpu.VMEM((TM, H_pad), jnp.float32)],
        ),
        compiler_params=pltpu.CompilerParams(
            dimension_semantics=("parallel", "arbitrary"),
            vmem_limit_bytes=vmem_limit,
        ),
        cost_estimate=cost,
    )(x_p, params["w1"], params["b1"], params["w2"], params["b2"])

    return out_padded[:M, :O]


def init_params(key, hidden_size, output_size, dtype=jnp.float32):
    """Deterministic synthetic params. Weights stored as (in, out)."""
    k1, k2, k3, k4 = jax.random.split(key, 4)
    s = 1.0 / jnp.sqrt(hidden_size)
    w1 = jax.random.uniform(k1, (hidden_size, hidden_size), dtype, -s, s)
    b1 = jax.random.uniform(k2, (hidden_size,), dtype, -s, s)
    w2 = jax.random.uniform(k3, (hidden_size, output_size), dtype, -s, s)
    b2 = jax.random.uniform(k4, (output_size,), dtype, -s, s)
    return w1, b1, w2, b2


if __name__ == "__main__":
    key = jax.random.PRNGKey(0)

    # ---- Test 1: small shapes, exact f32 path and production bf16 path.
    hidden_size, output_size, batch = 32, 8, 8
    kx, kp, krest = jax.random.split(key, 3)
    x = jax.random.normal(kx, (batch, hidden_size), jnp.float32)
    w1, b1, w2, b2 = init_params(kp, hidden_size, output_size)
    ref = jnp.tanh(x @ w1 + b1) @ w2 + b2          # dropout = identity (eval)

    params_f32 = prepare_params(w1, b1, w2, b2, compute_dtype=jnp.float32)
    out_f32 = jax.block_until_ready(classifier_forward(x, params_f32))
    assert out_f32.shape == (batch, output_size)
    assert jnp.allclose(out_f32, ref, atol=1e-5, rtol=1e-5)

    params_bf16 = prepare_params(w1, b1, w2, b2)   # bf16 MXU operands
    out_bf16 = jax.block_until_ready(classifier_forward(x, params_bf16))
    assert out_bf16.shape == (batch, output_size)
    assert jnp.allclose(out_bf16, ref, atol=5e-2, rtol=5e-2)

    # ---- Test 2: exercises balanced multi-row-tile grid and K-streaming
    #      (grid_m == 2, grid_k == 2) with the exact f32 path.
    hidden2, out2, batch2 = 256, 10, 300
    kx2, kp2 = jax.random.split(krest)
    x2 = jax.random.normal(kx2, (batch2, hidden2), jnp.float32)
    w1b, b1b, w2b, b2b = init_params(kp2, hidden2, out2)
    ref2 = jnp.tanh(x2 @ w1b + b1b) @ w2b + b2b
    params2 = prepare_params(w1b, b1b, w2b, b2b, compute_dtype=jnp.float32)
    out2_k = jax.block_until_ready(
        classifier_forward(x2, params2, tile_m=512, tile_k=128))
    assert out2_k.shape == (batch2, out2)
    assert jnp.allclose(out2_k, ref2, atol=1e-4, rtol=1e-4)

    print("KERNEL_OK")
</pallas_src>

<mosaic_0001>
module attributes {stable_mosaic.version = 11 : i64} {
  func.func @classifier_kernel(%arg0: i32, %arg1: i32, %arg2: memref<8x128xf32, #tpu.memory_space<vmem>>, %arg3: memref<128x128xf32, #tpu.memory_space<vmem>>, %arg4: memref<1x128xf32, #tpu.memory_space<vmem>>, %arg5: memref<128x128xf32, #tpu.memory_space<vmem>>, %arg6: memref<1x128xf32, #tpu.memory_space<vmem>>, %arg7: memref<8x128xf32, #tpu.memory_space<vmem>>, %arg8: memref<8x128xf32, #tpu.memory_space<vmem>>) attributes {dimension_semantics = [#tpu.dimension_semantics<parallel>, #tpu.dimension_semantics<arbitrary>], iteration_bounds = array<i64: 1, 1>, scalar_prefetch = 0 : i64, scratch_operands = 1 : i64, tpu.core_type = #tpu.core_type<tc>, window_params = [{transform_indices = @transform_0, window_bounds = array<i64: 8, 128>}, {transform_indices = @transform_1, window_bounds = array<i64: 128, 128>}, {pipeline_mode = #tpu.pipeline_mode<synchronous>, transform_indices = @transform_2, window_bounds = array<i64: 1, 128>}, {pipeline_mode = #tpu.pipeline_mode<synchronous>, transform_indices = @transform_3, window_bounds = array<i64: 128, 128>}, {pipeline_mode = #tpu.pipeline_mode<synchronous>, transform_indices = @transform_4, window_bounds = array<i64: 1, 128>}, {transform_indices = @transform_5, window_bounds = array<i64: 8, 128>}]} {
    %c0_i32 = arith.constant 0 : i32
    %0 = arith.cmpi eq, %arg1, %c0_i32 : i32
    %1 = arith.extui %0 : i1 to i32
    %c0_i32_0 = arith.constant 0 : i32
    %2 = arith.cmpi ne, %1, %c0_i32_0 : i32
    scf.if %2 {
      %cst_10 = arith.constant 0.000000e+00 : f32
      %12 = vector.broadcast %cst_10 : f32 to vector<8x128xf32>
      %c0_11 = arith.constant 0 : index
      %c0_12 = arith.constant 0 : index
      %13 = vector.load %arg8[%c0_11, %c0_12] : memref<8x128xf32, #tpu.memory_space<vmem>>, vector<8x128xf32>
      tpu.vector_store %arg8[%c0_11, %c0_12], %12 {strides = array<i32>} : memref<8x128xf32, #tpu.memory_space<vmem>>, vector<8x128xf32>,
    } else {
    }
    %c0 = arith.constant 0 : index
    %c0_1 = arith.constant 0 : index
    %3 = vector.load %arg2[%c0, %c0_1] : memref<8x128xf32, #tpu.memory_space<vmem>>, vector<8x128xf32>
    %c0_2 = arith.constant 0 : index
    %c0_3 = arith.constant 0 : index
    %4 = vector.load %arg8[%c0_2, %c0_3] : memref<8x128xf32, #tpu.memory_space<vmem>>, vector<8x128xf32>
    %c0_4 = arith.constant 0 : index
    %c0_5 = arith.constant 0 : index
    %5 = vector.load %arg3[%c0_4, %c0_5] : memref<128x128xf32, #tpu.memory_space<vmem>>, vector<128x128xf32>
    %cst = arith.constant dense<0.000000e+00> : vector<8x128xf32>
    %6 = tpu.matmul %3, %5, %cst {dimension_numbers = #tpu.dot_dimension_numbers<[1], [0], [0], [1], [0, 0, 1, 1], [], []>} : vector<8x128xf32>, vector<128x128xf32>, vector<8x128xf32> -> vector<8x128xf32>
    %7 = arith.addf %4, %6 : vector<8x128xf32>
    %c0_6 = arith.constant 0 : index
    %c0_7 = arith.constant 0 : index
    %8 = vector.load %arg8[%c0_6, %c0_7] : memref<8x128xf32, #tpu.memory_space<vmem>>, vector<8x128xf32>
    tpu.vector_store %arg8[%c0_6, %c0_7], %7 {strides = array<i32>} : memref<8x128xf32, #tpu.memory_space<vmem>>, vector<8x128xf32>,
    %c0_i32_8 = arith.constant 0 : i32
    %9 = arith.cmpi eq, %arg1, %c0_i32_8 : i32
    %10 = arith.extui %9 : i1 to i32
    %c0_i32_9 = arith.constant 0 : i32
    %11 = arith.cmpi ne, %10, %c0_i32_9 : i32
    scf.if %11 {
      %c0_10 = arith.constant 0 : index
      %c0_11 = arith.constant 0 : index
      %12 = vector.load %arg8[%c0_10, %c0_11] : memref<8x128xf32, #tpu.memory_space<vmem>>, vector<8x128xf32>
      %c0_12 = arith.constant 0 : index
      %c0_13 = arith.constant 0 : index
      %13 = vector.load %arg4[%c0_12, %c0_13] : memref<1x128xf32, #tpu.memory_space<vmem>>, vector<1x128xf32>
      %14 = vector.broadcast %13 : vector<1x128xf32> to vector<8x128xf32>
      %15 = arith.addf %12, %14 : vector<8x128xf32>
      %16 = math.tanh %15 : vector<8x128xf32>
      %c0_14 = arith.constant 0 : index
      %c0_15 = arith.constant 0 : index
      %17 = vector.load %arg5[%c0_14, %c0_15] : memref<128x128xf32, #tpu.memory_space<vmem>>, vector<128x128xf32>
      %cst_16 = arith.constant dense<0.000000e+00> : vector<8x128xf32>
      %18 = tpu.matmul %16, %17, %cst_16 {dimension_numbers = #tpu.dot_dimension_numbers<[1], [0], [0], [1], [0, 0, 1, 1], [], []>} : vector<8x128xf32>, vector<128x128xf32>, vector<8x128xf32> -> vector<8x128xf32>
      %c0_17 = arith.constant 0 : index
      %c0_18 = arith.constant 0 : index
      %19 = vector.load %arg6[%c0_17, %c0_18] : memref<1x128xf32, #tpu.memory_space<vmem>>, vector<1x128xf32>
      %20 = vector.broadcast %19 : vector<1x128xf32> to vector<8x128xf32>
      %21 = arith.addf %18, %20 : vector<8x128xf32>
      %c0_19 = arith.constant 0 : index
      %c0_20 = arith.constant 0 : index
      %22 = vector.load %arg7[%c0_19, %c0_20] : memref<8x128xf32, #tpu.memory_space<vmem>>, vector<8x128xf32>
      tpu.vector_store %arg7[%c0_19, %c0_20], %21 {strides = array<i32>} : memref<8x128xf32, #tpu.memory_space<vmem>>, vector<8x128xf32>,
    } else {
    }
    return
  }
  func.func @transform_0(%arg0: i32, %arg1: i32) -> (i32, i32) {
    %c0_i32 = arith.constant 0 : i32
    return %arg0, %arg1 : i32, i32
  }
  func.func @transform_1(%arg0: i32, %arg1: i32) -> (i32, i32) {
    %c0_i32 = arith.constant 0 : i32
    %c0_i32_0 = arith.constant 0 : i32
    return %arg1, %c0_i32 : i32, i32
  }
  func.func @transform_2(%arg0: i32, %arg1: i32) -> (i32, i32) {
    %c0_i32 = arith.constant 0 : i32
    %c0_i32_0 = arith.constant 0 : i32
    %c0_i32_1 = arith.constant 0 : i32
    return %c0_i32, %c0_i32_0 : i32, i32
  }
  func.func @transform_3(%arg0: i32, %arg1: i32) -> (i32, i32) {
    %c0_i32 = arith.constant 0 : i32
    %c0_i32_0 = arith.constant 0 : i32
    %c0_i32_1 = arith.constant 0 : i32
    return %c0_i32, %c0_i32_0 : i32, i32
  }
  func.func @transform_4(%arg0: i32, %arg1: i32) -> (i32, i32) {
    %c0_i32 = arith.constant 0 : i32
    %c0_i32_0 = arith.constant 0 : i32
    %c0_i32_1 = arith.constant 0 : i32
    return %c0_i32, %c0_i32_0 : i32, i32
  }
  func.func @transform_5(%arg0: i32, %arg1: i32) -> (i32, i32) {
    %c0_i32 = arith.constant 0 : i32
    %c0_i32_0 = arith.constant 0 : i32
    return %arg0, %c0_i32 : i32, i32
  }
}

</mosaic_0001>

<bundles_post_ra>
// kernel: tpu_custom_call.1
= control target key start
LH: loop header
LB: loop body
LE: loop exit
PB: predicated region body
PF: predicated region fallthrough
CT: control target
= control target key end

     0   :  { %10 = vsyncpa [#allocation4], 0  ;;  %s570_s0 = inlined_call_operand.hbm [shape: f32[8,128], index: 0, kind: input, shape index: {}]   ;;  %s571_s1 = inlined_call_operand.hbm [shape: f32[128,128], index: 1, kind: input, shape index: {}]   ;;  %s572_s2 = inlined_call_operand.vmem [shape: f32[1,128], index: 2, kind: input, shape index: {}]   ;;  %s573_s3 = inlined_call_operand.hbm [shape: f32[128,128], index: 3, kind: input, shape index: {}]   ;;  %s574_s4 = inlined_call_operand.vmem [shape: f32[1,128], index: 4, kind: input, shape index: {}]   ;;  %s575_s5 = inlined_call_operand.hbm [shape: f32[8,128], index: 5, kind: output, shape index: {}]  }
   0x1   :  { %11 = vsyncpa [#allocation7], 0 }
   0x2   :  { %12 = vsyncpa [#allocation5], 0  ;;  %s480_s18 = smov [#allocation6]  }
   0x3   :  { %s28_s19 = sshll.u32 %s480_s18, 4  ;;  %s29_s19 = int_to_ptr.vmem [resolvable:$true] %s28_s19 }
   0x4   :  { %s402_s20 = scalar_lea.vmem %s29_s19, 2048  ;;  %p407_p1 = scmp.lt.s32.totalorder %s29_s19, %s29_s19 }
   0x5   :  { %p403_p0 = scmp.ne.s32.totalorder %s29_s19, %s402_s20  ;;  %p408_p2 = scmp.lt.s32.totalorder %s402_s20, %s402_s20 }
   0x7   :  { %p409_p3 = por %p408_p2, %p407_p1 }
   0x9   :  { %p410_p4 = pnand %p409_p3, %p403_p0 }
   0xb   :  { %413 = shalt.err (!%p410_p4)
}
   0xc   :  { %s481_s21 = smov 128   ;;  %s482_s22 = smov 8  }
   0xd   :  { %34 = dma.hbm_to_vmem [thread:$0]  %s571_s1, 2048, %s29_s19, [#allocation7], %s481_s21, %s481_s21, %s482_s22  }
   0xe   :  { %s483_s25 = smov [#allocation3]   ;;  %s484_s27 = smov [#allocation8]  }
   0xf   :  { %s19_s26 = sshll.u32 %s483_s25, 4  ;;  %s42_s28 = sshll.u32 %s484_s27, 4  ;;  %s20_s26 = int_to_ptr.vmem [resolvable:$true] %s19_s26  ;;  %s43_s28 = int_to_ptr.vmem [resolvable:$true] %s42_s28 }
  0x10   :  { %s422_s29 = scalar_lea.vmem %s20_s26, 128  ;;  %p427_p6 = scmp.lt.s32.totalorder %s20_s26, %s20_s26 }
  0x11   :  { %p423_p5 = scmp.ne.s32.totalorder %s20_s26, %s422_s29  ;;  %p428_p7 = scmp.lt.s32.totalorder %s422_s29, %s422_s29 }
  0x13   :  { %p429_p8 = por %p428_p7, %p427_p6 }
  0x15   :  { %p430_p9 = pnand %p429_p8, %p423_p5 }
  0x17   :  { %433 = shalt.err (!%p430_p9)
}
  0x18   :  { %22 = dma.hbm_to_vmem [thread:$0]  %s570_s0, 128, %s20_s26, [#allocation4]  }
  0x19   :  { %s442_s7 = scalar_lea.vmem %s43_s28, 2048  ;;  %p447_p11 = scmp.lt.s32.totalorder %s43_s28, %s43_s28 }
  0x1a   :  { %p443_p10 = scmp.ne.s32.totalorder %s43_s28, %s442_s7  ;;  %p448_p12 = scmp.lt.s32.totalorder %s442_s7, %s442_s7 }
  0x1c   :  { %p449_p13 = por %p448_p12, %p447_p11 }
  0x1e   :  { %p450_p0 = pnand %p449_p13, %p443_p10 }
  0x20   :  { %453 = shalt.err (!%p450_p0)
}
  0x21   :  { %48 = dma.hbm_to_vmem [thread:$0]  %s573_s3, 2048, %s43_s28, [#allocation7], %s481_s21, %s481_s21, %s482_s22  }
  0x22   :  { %474 = dma.done.wait [#allocation4], 128  }
  0x23   :  { %475 = vsyncadd [#allocation4], 4294967168 }
  0x24   :  { %476 = dma.done.wait [#allocation7], 4096  }
  0x25   :  { %477 = vsyncadd [#allocation7], 4294963200  ;;  %v485_v0 = vmov 0.0   ;;  %vm486_vm0 = vmmov 0   ;;  %v82_v1 = vld [vmem:[#allocation6 + $0x78] sm:$0xff]  ;;  %v81_v2 = vld [vmem:[#allocation6 + $0x70] sm:$0xff] }
  0x26   :  { %314 = vmatprep.subr.mxu0 %v485_v0  ;;  %346 = vmatprep.mubr.msk.f32.mxu0 %vm486_vm0, %v485_v0  ;;  %v80_v3 = vld [vmem:[#allocation6 + $0x68] sm:$0xff]  ;;  %v79_v4 = vld [vmem:[#allocation6 + $0x60] sm:$0xff]  ;;  %v183_v5 = vld [vmem:[#allocation8 + $0x78] sm:$0xff]  ;;  %s487_s11 = smov [#allocation9]  }
  0x27   :  { %349 = vmatprep.subr.mxu1 %v485_v0  ;;  %381 = vmatprep.mubr.msk.f32.mxu1 %vm486_vm0, %v485_v0  ;;  %v78_v6 = vld [vmem:[#allocation6 + $0x58] sm:$0xff]  ;;  %v182_v7 = vld [vmem:[#allocation8 + $0x70] sm:$0xff]  ;;  %v181_v8 = vld [vmem:[#allocation8 + $0x68] sm:$0xff]  ;;  %s268_s12 = sshll.u32 %s487_s11, 4  ;;  %s269_s12 = int_to_ptr.vmem [resolvable:$true] %s268_s12 }
  0x28   :  { %315 = vmatpush3.msra.mxu0 %v82_v1  ;;  %350 = vmatpush3.msra.mxu1 %v183_v5  ;;  %v77_v9 = vld [vmem:[#allocation6 + $0x50] sm:$0xff]  ;;  %v180_v10 = vld [vmem:[#allocation8 + $0x60] sm:$0xff]  ;;  %v76_v11 = vld [vmem:[#allocation6 + $0x48] sm:$0xff]  ;;  %s454_s13 = scalar_lea.vmem %s269_s12, 128  ;;  %p459_p2 = scmp.lt.s32.totalorder %s269_s12, %s269_s12 }
  0x29   :  { %316 = vmatprep.subr.mxu0 %v485_v0  ;;  %351 = vmatprep.subr.mxu1 %v485_v0  ;;  %v179_v12 = vld [vmem:[#allocation8 + $0x58] sm:$0xff]  ;;  %v75_v13 = vld [vmem:[#allocation6 + $0x40] sm:$0xff]  ;;  %v178_v14 = vld [vmem:[#allocation8 + $0x50] sm:$0xff]  ;;  %p455_p1 = scmp.ne.s32.totalorder %s269_s12, %s454_s13  ;;  %p460_p3 = scmp.lt.s32.totalorder %s454_s13, %s454_s13 }
  0x2a   :  { %317 = vmatpush3.msra.mxu0 %v81_v2  ;;  %352 = vmatpush3.msra.mxu1 %v182_v7  ;;  %v74_v15 = vld [vmem:[#allocation6 + $0x38] sm:$0xff]  ;;  %v177_v16 = vld [vmem:[#allocation8 + $0x48] sm:$0xff]  ;;  %v73_v17 = vld [vmem:[#allocation6 + $0x30] sm:$0xff] }
  0x2b   :  { %318 = vmatprep.subr.mxu0 %v485_v0  ;;  %353 = vmatprep.subr.mxu1 %v485_v0  ;;  %v72_v18 = vld [vmem:[#allocation6 + $0x28] sm:$0xff]  ;;  %v71_v19 = vld [vmem:[#allocation6 + $0x20] sm:$0xff]  ;;  %v70_v20 = vld [vmem:[#allocation6 + $0x18] sm:$0xff]  ;;  %p461_p4 = por %p460_p3, %p459_p2 }
  0x2c   :  { %319 = vmatpush3.msra.mxu0 %v80_v3  ;;  %354 = vmatpush3.msra.mxu1 %v181_v8  ;;  %v69_v21 = vld [vmem:[#allocation6 + $0x10] sm:$0xff]  ;;  %v68_v22 = vld [vmem:[#allocation6 + $0x8] sm:$0xff]  ;;  %v67_v23 = vld [vmem:[#allocation6] sm:$0xff] }
  0x2d   :  { %320 = vmatprep.subr.mxu0 %v485_v0  ;;  %355 = vmatprep.subr.mxu1 %v485_v0  ;;  %v65_v24 = vld [vmem:[#allocation3] sm:$0xff]  ;;  %v176_v25 = vld [vmem:[#allocation8 + $0x40] sm:$0xff]  ;;  %v174_v27 = vld [vmem:[#allocation8 + $0x30] sm:$0xff]  ;;  %p462_p5 = pnand %p461_p4, %p455_p1 }
  0x2e   :  { %321 = vmatpush3.msra.mxu0 %v79_v4  ;;  %356 = vmatpush3.msra.mxu1 %v180_v10  ;;  %v175_v26 = vld [vmem:[#allocation8 + $0x38] sm:$0xff]  ;;  %v173_v28 = vld [vmem:[#allocation8 + $0x28] sm:$0xff]  ;;  %v172_v29 = vld [vmem:[#allocation8 + $0x20] sm:$0xff] }
  0x2f   :  { %322 = vmatprep.subr.mxu0 %v485_v0  ;;  %357 = vmatprep.subr.mxu1 %v485_v0  ;;  %v171_v30 = vld [vmem:[#allocation8 + $0x18] sm:$0xff]  ;;  %v170_v31 = vld [vmem:[#allocation8 + $0x10] sm:$0xff]  ;;  %v169_v32 = vld [vmem:[#allocation8 + $0x8] sm:$0xff] }
  0x30   :  { %323 = vmatpush3.msra.mxu0 %v78_v6  ;;  %358 = vmatpush3.msra.mxu1 %v179_v12  ;;  %v168_v33 = vld [vmem:[#allocation8] sm:$0xff]  ;;  %v278_v34 = vld [vmem:[%s572_s2] ss:$0 sm:$0xff] }
  0x31   :  { %324 = vmatprep.subr.mxu0 %v485_v0  ;;  %359 = vmatprep.subr.mxu1 %v485_v0  ;;  %v279_v39 = vld [vmem:[%s574_s4] ss:$0 sm:$0xff] }
  0x32   :  { %325 = vmatpush3.msra.mxu0 %v77_v9  ;;  %360 = vmatpush3.msra.mxu1 %v178_v14 }
  0x33   :  { %326 = vmatprep.subr.mxu0 %v485_v0  ;;  %361 = vmatprep.subr.mxu1 %v485_v0 }
  0x34   :  { %327 = vmatpush3.msra.mxu0 %v76_v11  ;;  %362 = vmatpush3.msra.mxu1 %v177_v16 }
  0x35   :  { %328 = vmatprep.subr.mxu0 %v485_v0  ;;  %363 = vmatprep.subr.mxu1 %v485_v0 }
  0x36   :  { %329 = vmatpush3.msra.mxu0 %v75_v13  ;;  %364 = vmatpush3.msra.mxu1 %v176_v25 }
  0x37   :  { %330 = vmatprep.subr.mxu0 %v485_v0  ;;  %365 = vmatprep.subr.mxu1 %v485_v0 }
  0x38   :  { %331 = vmatpush3.msra.mxu0 %v74_v15  ;;  %366 = vmatpush3.msra.mxu1 %v175_v26 }
  0x39   :  { %332 = vmatprep.subr.mxu0 %v485_v0  ;;  %367 = vmatprep.subr.mxu1 %v485_v0 }
  0x3a   :  { %333 = vmatpush3.msra.mxu0 %v73_v17  ;;  %368 = vmatpush3.msra.mxu1 %v174_v27 }
  0x3b   :  { %334 = vmatprep.subr.mxu0 %v485_v0  ;;  %369 = vmatprep.subr.mxu1 %v485_v0 }
  0x3c   :  { %335 = vmatpush3.msra.mxu0 %v72_v18  ;;  %370 = vmatpush3.msra.mxu1 %v173_v28 }
  0x3d   :  { %336 = vmatprep.subr.mxu0 %v485_v0  ;;  %371 = vmatprep.subr.mxu1 %v485_v0 }
  0x3e   :  { %337 = vmatpush3.msra.mxu0 %v71_v19  ;;  %372 = vmatpush3.msra.mxu1 %v172_v29 }
  0x3f   :  { %338 = vmatprep.subr.mxu0 %v485_v0  ;;  %373 = vmatprep.subr.mxu1 %v485_v0 }
  0x40   :  { %339 = vmatpush3.msra.mxu0 %v70_v20  ;;  %374 = vmatpush3.msra.mxu1 %v171_v30 }
  0x41   :  { %340 = vmatprep.subr.mxu0 %v485_v0  ;;  %375 = vmatprep.subr.mxu1 %v485_v0 }
  0x42   :  { %341 = vmatpush3.msra.mxu0 %v69_v21  ;;  %376 = vmatpush3.msra.mxu1 %v170_v31 }
  0x43   :  { %342 = vmatprep.subr.mxu0 %v485_v0  ;;  %377 = vmatprep.subr.mxu1 %v485_v0 }
  0x44   :  { %343 = vmatpush3.msra.mxu0 %v68_v22  ;;  %378 = vmatpush3.msra.mxu1 %v169_v32 }
  0x45   :  { %344 = vmatprep.subr.mxu0 %v485_v0  ;;  %379 = vmatprep.subr.mxu1 %v485_v0 }
  0x46   :  { %345 = vmatpush3.msra.mxu0 %v67_v23  ;;  %380 = vmatpush3.msra.mxu1 %v168_v33 }
  0x47   :  { %347 = vmatmul.mubr.f32.vlgmr.msra.gmra.mxu0 %v65_v24 }
 0x107   :  { %v149_v35 = vpop.f32.mrf.mxu0 }
 0x108   :  { %v166_v36 = vadd.f32 %v278_v34, %v149_v35 }
 0x109   :  { %v348_v37 = vpop.f32.mrf.mxu0 }
 0x10a   :  { %392 = vtanh.f32 %v166_v36 }
 0x117   :  { %v393_v38 = vpop.eup %392 }
 0x118   :  { %382 = vmatmul.mubr.f32.vlgmr.msra.gmra.mxu1 %v393_v38 }
 0x1d8   :  { %v257_v40 = vpop.f32.mrf.mxu1 }
 0x1d9   :  { %v258_v41 = vadd.f32 %v279_v39, %v257_v40 }
 0x1da   :  { %v383_v42 = vpop.f32.mrf.mxu1 }
 0x1db   :  { %261 = vst [vmem:[#allocation9] sm:$0xff] %v258_v41 }
 0x1dc   :  { %465 = shalt.err (!%p462_p5)
}
 0x1dd   :  { %271 = dma.vmem_to_hbm [thread:$0]  %s269_s12, 128, %s575_s5, [#allocation5]  }
 0x1de   :  { %478 = dma.done.wait [#allocation5], 128  }
 0x1df   :  { %479 = vsyncadd [#allocation5], 4294967168 }
 0x1e0   :  { %275 = vsyncpa [#allocation4], 1 }
 0x1e1   :  { %276 = vsyncpa [#allocation7], 1 }
 0x1e2   :  { %277 = vsyncpa [#allocation5], 1 }

</bundles_post_ra>
